<compile_context>
chip_gen: v6e
topology: v6e:2x2x1
jax: 0.10.0
libtpu: 0.0.40
codegen_flags: <defaults>
</compile_context>

<pallas_src>
import functools

import jax
import jax.numpy as jnp
from jax.experimental import pallas as pl
from jax.experimental.pallas import tpu as pltpu

# Padded (lane-friendly) widths.  128 covers obs_dim+1, 2*hidden+1 and A+1.
K_PAD = 128       # padded input width  (obs features | constant-1 | zeros)
H_PAD = 128       # padded fused hidden width (actor h | critic h | zeros | 1)
N_PAD = 128       # padded head width   (A logits | value | zeros)
CONST_COL = 127   # lane carrying the constant 1 through the hidden layers


def _make_kernel(num_actions):
    A = num_actions

    def kernel(x_ref, w1_ref, w2_ref, w3_ref, out_ref):
        w_dtype = w1_ref.dtype
        x = x_ref[...].astype(w_dtype)

        # fused actor|critic layer 1/2 (biases folded via the constant-1 lane)
        h1 = jnp.maximum(
            jnp.dot(x, w1_ref[...], preferred_element_type=jnp.float32), 0.0)
        h2 = jnp.maximum(
            jnp.dot(h1.astype(w_dtype), w2_ref[...],
                    preferred_element_type=jnp.float32), 0.0)
        head = jnp.dot(h2.astype(w_dtype), w3_ref[...],
                       preferred_element_type=jnp.float32)

        # masked, numerically stable softmax over the A logit lanes
        col = jax.lax.broadcasted_iota(jnp.int32, head.shape, 1)
        is_logit = col < A
        neg = jnp.float32(-1e30)
        m = jnp.max(jnp.where(is_logit, head, neg), axis=-1, keepdims=True)
        e = jnp.where(is_logit, jnp.exp(head - m), 0.0)
        denom = jnp.sum(e, axis=-1, keepdims=True)
        policy = e * pl.reciprocal(denom, approx=True)  # divide on the EUP slot

        # single lane-dense output slab: policy [0:A], value at col A, zeros after
        out_ref[...] = jnp.where(is_logit, policy,
                                 jnp.where(col == A, head, 0.0))

    return kernel


@functools.partial(jax.jit, static_argnames=("num_actions",))
def actor_critic_pallas(obs, packed, num_actions):
    """Fused actor/critic forward.

    obs:    (B, obs_dim) float32
    packed: dict of pre-padded fused weights w1/w2/w3 (see pack_params)
    returns policy (B, A) float32, value (B, 1) float32
    """
    B, obs_dim = obs.shape
    b_pad = ((B + 7) // 8) * 8
    # pad obs to (b_pad, K_PAD) and plant the constant-1 feature at col obs_dim
    x = jnp.zeros((b_pad, K_PAD), jnp.float32)
    x = x.at[:B, :obs_dim].set(obs.astype(jnp.float32))
    x = x.at[:B, obs_dim].set(1.0)

    # TODO(synk): if batch ever grows large, add a batch-tiled grid axis marked
    # "parallel" so the second TensorCore on v7x gets half the rows.
    out = pl.pallas_call(
        _make_kernel(num_actions),
        out_shape=jax.ShapeDtypeStruct((b_pad, N_PAD), jnp.float32),
        in_specs=[pl.BlockSpec(memory_space=pltpu.MemorySpace.VMEM)] * 4,
        out_specs=pl.BlockSpec(memory_space=pltpu.MemorySpace.VMEM),
    )(x, packed["w1"], packed["w2"], packed["w3"])

    policy = out[:B, :num_actions]
    value = out[:B, num_actions:num_actions + 1]
    return policy, value


def pack_params(p, obs_dim, hidden_sizes, action_dim, weight_dtype=jnp.float32):
    """Pack actor+critic weights into 3 padded, block-structured matmul slabs.

    Layout (host-side, done once):
      w1 (K_PAD, H_PAD): cols [0:h1] actor fc1, [h1:2h1] critic fc1;
                         row obs_dim = biases (obs carries a 1 there);
                         col 127 gets a 1 so h1[:,127] == 1 after the matmul.
      w2 (H_PAD, H_PAD): block-diag actor/critic fc2; row 127 = biases;
                         w2[127,127] = 1 keeps the constant-1 lane alive.
      w3 (H_PAD, N_PAD): cols [0:A] actor head, col A critic head;
                         row 127 = head biases.
    """
    h1, h2 = hidden_sizes
    A = action_dim
    assert obs_dim + 1 <= K_PAD
    assert 2 * h1 + 1 <= H_PAD and 2 * h2 + 1 <= H_PAD
    assert A + 1 <= N_PAD
    one_col = obs_dim

    w1 = jnp.zeros((K_PAD, H_PAD), jnp.float32)
    w1 = w1.at[:obs_dim, 0:h1].set(p["a_w1"])
    w1 = w1.at[:obs_dim, h1:2 * h1].set(p["c_w1"])
    w1 = w1.at[one_col, 0:h1].set(p["a_b1"].reshape(-1))
    w1 = w1.at[one_col, h1:2 * h1].set(p["c_b1"].reshape(-1))
    w1 = w1.at[one_col, CONST_COL].set(1.0)

    w2 = jnp.zeros((H_PAD, H_PAD), jnp.float32)
    w2 = w2.at[0:h1, 0:h2].set(p["a_w2"])
    w2 = w2.at[h1:2 * h1, h2:2 * h2].set(p["c_w2"])
    w2 = w2.at[CONST_COL, 0:h2].set(p["a_b2"].reshape(-1))
    w2 = w2.at[CONST_COL, h2:2 * h2].set(p["c_b2"].reshape(-1))
    w2 = w2.at[CONST_COL, CONST_COL].set(1.0)

    w3 = jnp.zeros((H_PAD, N_PAD), jnp.float32)
    w3 = w3.at[0:h2, 0:A].set(p["a_wh"])
    w3 = w3.at[h2:2 * h2, A:A + 1].set(p["c_wh"])
    w3 = w3.at[CONST_COL, 0:A].set(p["a_bh"].reshape(-1))
    w3 = w3.at[CONST_COL, A].set(p["c_bh"].reshape(-1)[0])

    # TODO(synk): on v6e/v7x, weight_dtype=jnp.bfloat16 takes the fast MXU
    # path; kept f32 here so the same script is also right for v5e and stays
    # bit-closer to the PyTorch f32 reference.
    return {"w1": w1.astype(weight_dtype),
            "w2": w2.astype(weight_dtype),
            "w3": w3.astype(weight_dtype)}


def forward(obs, packed, num_actions, key):
    """Mirrors ActorCritic.forward: returns (action.item(), value.item(), policy).

    The int()/float() conversions are the only host syncs, matching the
    PyTorch .item() calls; callers who want to stay on-device should use
    actor_critic_pallas directly.
    """
    policy, value = actor_critic_pallas(obs, packed, num_actions)
    # sample from Categorical(policy), like torch.distributions.Categorical
    action = jax.random.categorical(key, jnp.log(policy[0] + 1e-30))
    return int(action), float(value[0, 0]), policy


def get_best_action(obs, packed, num_actions):
    """Mirrors ActorCritic.get_best_action."""
    policy, _ = actor_critic_pallas(obs, packed, num_actions)
    return int(jnp.argmax(policy[0]))


def init_params(key, obs_dim, hidden_sizes, action_dim):
    """Deterministic Kaiming-uniform-ish init matching nn.Linear shapes."""
    h1, h2 = hidden_sizes

    def linear(key, fan_in, fan_out):
        kw, kb = jax.random.split(key)
        bound = 1.0 / jnp.sqrt(fan_in)
        w = jax.random.uniform(kw, (fan_in, fan_out), jnp.float32, -bound, bound)
        b = jax.random.uniform(kb, (1, fan_out), jnp.float32, -bound, bound)
        return w, b

    keys = jax.random.split(key, 6)
    a_w1, a_b1 = linear(keys[0], obs_dim, h1)
    a_w2, a_b2 = linear(keys[1], h1, h2)
    a_wh, a_bh = linear(keys[2], h2, action_dim)
    c_w1, c_b1 = linear(keys[3], obs_dim, h1)
    c_w2, c_b2 = linear(keys[4], h1, h2)
    c_wh, c_bh = linear(keys[5], h2, 1)
    return dict(
        a_w1=a_w1, a_b1=a_b1, a_w2=a_w2, a_b2=a_b2, a_wh=a_wh, a_bh=a_bh,
        c_w1=c_w1, c_b1=c_b1, c_w2=c_w2, c_b2=c_b2, c_wh=c_wh, c_bh=c_bh,
    )


def _reference(obs, p):
    """Pure-JAX reference of the same forward pass (unfused, unpadded)."""
    a1 = jnp.maximum(obs @ p["a_w1"] + p["a_b1"], 0.0)
    a2 = jnp.maximum(a1 @ p["a_w2"] + p["a_b2"], 0.0)
    logits = a2 @ p["a_wh"] + p["a_bh"]
    policy = jax.nn.softmax(logits, axis=-1)
    c1 = jnp.maximum(obs @ p["c_w1"] + p["c_b1"], 0.0)
    c2 = jnp.maximum(c1 @ p["c_w2"] + p["c_b2"], 0.0)
    value = c2 @ p["c_wh"] + p["c_bh"]
    return policy, value


if __name__ == "__main__":
    # Shapes implied by the module: obs_dim from observation_space, small MLP
    # hidden sizes, discrete action space, batch=1 (forward calls .item()).
    OBS_DIM = 16
    HIDDEN_SIZES = (32, 32)
    ACTION_DIM = 4
    BATCH = 1

    key = jax.random.PRNGKey(0)
    k_param, k_obs, k_act = jax.random.split(key, 3)
    params = init_params(k_param, OBS_DIM, HIDDEN_SIZES, ACTION_DIM)
    packed = pack_params(params, OBS_DIM, HIDDEN_SIZES, ACTION_DIM)
    obs = jax.random.normal(k_obs, (BATCH, OBS_DIM), dtype=jnp.float32)

    policy, value = actor_critic_pallas(obs, packed, ACTION_DIM)
    jax.block_until_ready((policy, value))

    # correctness check against the pure-JAX reference
    ref_policy, ref_value = _reference(obs, params)
    assert policy.shape == (BATCH, ACTION_DIM) and value.shape == (BATCH, 1)
    assert jnp.allclose(policy, ref_policy, atol=2e-3, rtol=2e-3), (policy, ref_policy)
    assert jnp.allclose(value, ref_value, atol=1e-3, rtol=1e-3), (value, ref_value)
    assert jnp.allclose(jnp.sum(policy, axis=-1), 1.0, atol=2e-3)

    action, val, pol = forward(obs, packed, ACTION_DIM, k_act)
    assert isinstance(action, int) and 0 <= action < ACTION_DIM
    assert pol.shape == (BATCH, ACTION_DIM)
    assert isinstance(get_best_action(obs, packed, ACTION_DIM), int)

    print("KERNEL_OK")
</pallas_src>

<mosaic_0001>
module attributes {stable_mosaic.version = 11 : i64} {
  func.func @kernel(%arg0: memref<8x128xf32, #tpu.memory_space<vmem>>, %arg1: memref<128x128xf32, #tpu.memory_space<vmem>>, %arg2: memref<128x128xf32, #tpu.memory_space<vmem>>, %arg3: memref<128x128xf32, #tpu.memory_space<vmem>>, %arg4: memref<8x128xf32, #tpu.memory_space<vmem>>) attributes {dimension_semantics = [], scalar_prefetch = 0 : i64, scratch_operands = 0 : i64, tpu.core_type = #tpu.core_type<tc>} {
    %c0 = arith.constant 0 : index
    %c0_0 = arith.constant 0 : index
    %0 = vector.load %arg0[%c0, %c0_0] : memref<8x128xf32, #tpu.memory_space<vmem>>, vector<8x128xf32>
    %c0_1 = arith.constant 0 : index
    %c0_2 = arith.constant 0 : index
    %1 = vector.load %arg1[%c0_1, %c0_2] : memref<128x128xf32, #tpu.memory_space<vmem>>, vector<128x128xf32>
    %cst = arith.constant dense<0.000000e+00> : vector<8x128xf32>
    %2 = tpu.matmul %0, %1, %cst {dimension_numbers = #tpu.dot_dimension_numbers<[1], [0], [0], [1], [0, 0, 1, 1], [], []>} : vector<8x128xf32>, vector<128x128xf32>, vector<8x128xf32> -> vector<8x128xf32>
    %cst_3 = arith.constant 0.000000e+00 : f32
    %3 = vector.broadcast %cst_3 : f32 to vector<8x128xf32>
    %4 = arith.maximumf %2, %3 : vector<8x128xf32>
    %c0_4 = arith.constant 0 : index
    %c0_5 = arith.constant 0 : index
    %5 = vector.load %arg2[%c0_4, %c0_5] : memref<128x128xf32, #tpu.memory_space<vmem>>, vector<128x128xf32>
    %cst_6 = arith.constant dense<0.000000e+00> : vector<8x128xf32>
    %6 = tpu.matmul %4, %5, %cst_6 {dimension_numbers = #tpu.dot_dimension_numbers<[1], [0], [0], [1], [0, 0, 1, 1], [], []>} : vector<8x128xf32>, vector<128x128xf32>, vector<8x128xf32> -> vector<8x128xf32>
    %cst_7 = arith.constant 0.000000e+00 : f32
    %7 = vector.broadcast %cst_7 : f32 to vector<8x128xf32>
    %8 = arith.maximumf %6, %7 : vector<8x128xf32>
    %c0_8 = arith.constant 0 : index
    %c0_9 = arith.constant 0 : index
    %9 = vector.load %arg3[%c0_8, %c0_9] : memref<128x128xf32, #tpu.memory_space<vmem>>, vector<128x128xf32>
    %cst_10 = arith.constant dense<0.000000e+00> : vector<8x128xf32>
    %10 = tpu.matmul %8, %9, %cst_10 {dimension_numbers = #tpu.dot_dimension_numbers<[1], [0], [0], [1], [0, 0, 1, 1], [], []>} : vector<8x128xf32>, vector<128x128xf32>, vector<8x128xf32> -> vector<8x128xf32>
    %11 = tpu.iota {dimensions = array<i32: 1>} : vector<8x128xi32>
    %c4_i32 = arith.constant 4 : i32
    %12 = vector.broadcast %c4_i32 : i32 to vector<8x128xi32>
    %13 = arith.cmpi slt, %11, %12 : vector<8x128xi32>
    %cst_11 = arith.constant -1.000000e+30 : f32
    %14 = vector.broadcast %cst_11 : f32 to vector<8x128xf32>
    %15 = arith.select %13, %10, %14 : vector<8x128xi1>, vector<8x128xf32>
    %cst_12 = arith.constant dense<0xFF800000> : vector<8xf32>
    %16 = vector.multi_reduction <maximumf>, %15, %cst_12 [1] : vector<8x128xf32> to vector<8xf32>
    %17 = vector.shape_cast %16 : vector<8xf32> to vector<8x1xf32>
    %18 = vector.broadcast %17 : vector<8x1xf32> to vector<8x128xf32>
    %19 = arith.subf %10, %18 : vector<8x128xf32>
    %20 = math.exp %19 : vector<8x128xf32>
    %cst_13 = arith.constant 0.000000e+00 : f32
    %21 = vector.broadcast %cst_13 : f32 to vector<8x128xf32>
    %22 = arith.select %13, %20, %21 : vector<8x128xi1>, vector<8x128xf32>
    %cst_14 = arith.constant dense<0.000000e+00> : vector<8xf32>
    %23 = vector.multi_reduction <add>, %22, %cst_14 [1] : vector<8x128xf32> to vector<8xf32>
    %24 = vector.shape_cast %23 : vector<8xf32> to vector<8x1xf32>
    %25 = tpu.reciprocal %24 {approx = true} : vector<8x1xf32> -> vector<8x1xf32>
    %26 = vector.broadcast %25 : vector<8x1xf32> to vector<8x128xf32>
    %27 = arith.mulf %22, %26 : vector<8x128xf32>
    %c4_i32_15 = arith.constant 4 : i32
    %28 = vector.broadcast %c4_i32_15 : i32 to vector<8x128xi32>
    %29 = arith.cmpi eq, %11, %28 : vector<8x128xi32>
    %cst_16 = arith.constant 0.000000e+00 : f32
    %30 = vector.broadcast %cst_16 : f32 to vector<8x128xf32>
    %31 = arith.select %29, %10, %30 : vector<8x128xi1>, vector<8x128xf32>
    %32 = arith.select %13, %27, %31 : vector<8x128xi1>, vector<8x128xf32>
    %c0_17 = arith.constant 0 : index
    %c0_18 = arith.constant 0 : index
    %33 = vector.load %arg4[%c0_17, %c0_18] : memref<8x128xf32, #tpu.memory_space<vmem>>, vector<8x128xf32>
    tpu.vector_store %arg4[%c0_17, %c0_18], %32 {strides = array<i32>} : memref<8x128xf32, #tpu.memory_space<vmem>>, vector<8x128xf32>,
    return
  }
}

</mosaic_0001>

<bundles_post_ra>
// kernel: actor_critic_pallas.1
= control target key start
LH: loop header
LB: loop body
LE: loop exit
PB: predicated region body
PF: predicated region fallthrough
CT: control target
= control target key end

     0   :  { %9 = vsyncpa [#allocation3], 0  ;;  %s678_s0 = inlined_call_operand.vmem [shape: f32[8,128], index: 0, kind: input, shape index: {}]   ;;  %s679_s1 = inlined_call_operand.hbm [shape: f32[128,128], index: 1, kind: input, shape index: {}]   ;;  %s680_s2 = inlined_call_operand.hbm [shape: f32[128,128], index: 2, kind: input, shape index: {}]   ;;  %s681_s3 = inlined_call_operand.hbm [shape: f32[128,128], index: 3, kind: input, shape index: {}]   ;;  %s682_s4 = inlined_call_operand.vmem [shape: f32[8,128], index: 4, kind: output, shape index: {}]  }
   0x1   :  { %10 = vsyncpa [#allocation5], 0  ;;  %s574_s15 = smov [#allocation4]   ;;  %s575_s17 = smov [#allocation2]  }
   0x2   :  { %s30_s16 = sshll.u32 %s574_s15, 4  ;;  %s18_s18 = sshll.u32 %s575_s17, 4  ;;  %s31_s16 = int_to_ptr.vmem [resolvable:$true] %s30_s16  ;;  %s19_s18 = int_to_ptr.vmem [resolvable:$true] %s18_s18 }
   0x3   :  { %s518_s19 = scalar_lea.vmem %s31_s16, 2048  ;;  %p523_p1 = scmp.lt.s32.totalorder %s31_s16, %s31_s16 }
   0x4   :  { %p519_p0 = scmp.ne.s32.totalorder %s31_s16, %s518_s19  ;;  %p524_p2 = scmp.lt.s32.totalorder %s518_s19, %s518_s19 }
   0x6   :  { %p525_p3 = por %p524_p2, %p523_p1 }
   0x8   :  { %p526_p4 = pnand %p525_p3, %p519_p0 }
   0xa   :  { %529 = shalt.err (!%p526_p4)
}
   0xb   :  { %s576_s20 = smov 128   ;;  %s577_s21 = smov 8  }
   0xc   :  { %36 = dma.hbm_to_vmem [thread:$0]  %s680_s2, 2048, %s31_s16, [#allocation5], %s576_s20, %s576_s20, %s577_s21  }
   0xd   :  { %s538_s24 = scalar_lea.vmem %s19_s18, 2048  ;;  %p543_p6 = scmp.lt.s32.totalorder %s19_s18, %s19_s18 }
   0xe   :  { %p539_p5 = scmp.ne.s32.totalorder %s19_s18, %s538_s24  ;;  %p544_p7 = scmp.lt.s32.totalorder %s538_s24, %s538_s24 }
  0x10   :  { %p545_p8 = por %p544_p7, %p543_p6 }
  0x12   :  { %p546_p9 = pnand %p545_p8, %p539_p5 }
  0x14   :  { %549 = shalt.err (!%p546_p9)
}
  0x15   :  { %24 = dma.hbm_to_vmem [thread:$0]  %s679_s1, 2048, %s19_s18, [#allocation3], %s576_s20, %s576_s20, %s577_s21  }
  0x16   :  { %s578_s27 = smov [#allocation6]  }
  0x17   :  { %s42_s28 = sshll.u32 %s578_s27, 4  ;;  %s43_s28 = int_to_ptr.vmem [resolvable:$true] %s42_s28 }
  0x18   :  { %s558_s29 = scalar_lea.vmem %s43_s28, 2048  ;;  %p563_p11 = scmp.lt.s32.totalorder %s43_s28, %s43_s28 }
  0x19   :  { %p559_p10 = scmp.ne.s32.totalorder %s43_s28, %s558_s29  ;;  %p564_p12 = scmp.lt.s32.totalorder %s558_s29, %s558_s29 }
  0x1b   :  { %p565_p13 = por %p564_p12, %p563_p11 }
  0x1d   :  { %p566_p0 = pnand %p565_p13, %p559_p10 }
  0x1f   :  { %569 = shalt.err (!%p566_p0)
}
  0x20   :  { %48 = dma.hbm_to_vmem [thread:$0]  %s681_s3, 2048, %s43_s28, [#allocation5], %s576_s20, %s576_s20, %s577_s21  }
  0x21   :  { %570 = dma.done.wait [#allocation3], 2048  }
  0x22   :  { %571 = vsyncadd [#allocation3], 4294965248 }
  0x23   :  { %572 = dma.done.wait [#allocation5], 4096  }
  0x24   :  { %573 = vsyncadd [#allocation5], 4294963200  ;;  %v579_v0 = vmov 0.0   ;;  %vm580_vm0 = vmmov 0   ;;  %v74_v1 = vld [vmem:[#allocation2 + $0x78] sm:$0xff]  ;;  %v73_v2 = vld [vmem:[#allocation2 + $0x70] sm:$0xff]  ;;  %v319_v56 = vlaneseq }
  0x25   :  { %394 = vmatprep.subr.mxu0 %v579_v0  ;;  %426 = vmatprep.mubr.msk.f32.mxu0 %vm580_vm0, %v579_v0  ;;  %v72_v3 = vld [vmem:[#allocation2 + $0x68] sm:$0xff]  ;;  %v71_v4 = vld [vmem:[#allocation2 + $0x60] sm:$0xff]  ;;  %v161_v5 = vld [vmem:[#allocation4 + $0x78] sm:$0xff] }
  0x26   :  { %429 = vmatprep.subr.mxu1 %v579_v0  ;;  %461 = vmatprep.mubr.msk.f32.mxu1 %vm580_vm0, %v579_v0  ;;  %v70_v6 = vld [vmem:[#allocation2 + $0x58] sm:$0xff]  ;;  %v160_v7 = vld [vmem:[#allocation4 + $0x70] sm:$0xff]  ;;  %v159_v8 = vld [vmem:[#allocation4 + $0x68] sm:$0xff]  ;;  %v320_v57 = vand.u32 127, %v319_v56 }
  0x27   :  { %395 = vmatpush3.msra.mxu0 %v74_v1  ;;  %430 = vmatpush3.msra.mxu1 %v161_v5  ;;  %v69_v9 = vld [vmem:[#allocation2 + $0x50] sm:$0xff]  ;;  %v158_v10 = vld [vmem:[#allocation4 + $0x60] sm:$0xff]  ;;  %v68_v11 = vld [vmem:[#allocation2 + $0x48] sm:$0xff] }
  0x28   :  { %396 = vmatprep.subr.mxu0 %v579_v0  ;;  %431 = vmatprep.subr.mxu1 %v579_v0  ;;  %v157_v12 = vld [vmem:[#allocation4 + $0x58] sm:$0xff]  ;;  %v67_v13 = vld [vmem:[#allocation2 + $0x40] sm:$0xff]  ;;  %v156_v14 = vld [vmem:[#allocation4 + $0x50] sm:$0xff]  ;;  %vm321_vm1 = vcmp.lt.s32.totalorder %v320_v57, 4  ;;  %vm333_vm2 = vcmp.eq.s32.totalorder %v320_v57, 4 }
  0x29   :  { %397 = vmatpush3.msra.mxu0 %v73_v2  ;;  %432 = vmatpush3.msra.mxu1 %v160_v7  ;;  %v66_v15 = vld [vmem:[#allocation2 + $0x38] sm:$0xff]  ;;  %v155_v16 = vld [vmem:[#allocation4 + $0x48] sm:$0xff]  ;;  %v65_v17 = vld [vmem:[#allocation2 + $0x30] sm:$0xff] }
  0x2a   :  { %398 = vmatprep.subr.mxu0 %v579_v0  ;;  %433 = vmatprep.subr.mxu1 %v579_v0  ;;  %v154_v18 = vld [vmem:[#allocation4 + $0x40] sm:$0xff]  ;;  %v64_v19 = vld [vmem:[#allocation2 + $0x28] sm:$0xff]  ;;  %v153_v20 = vld [vmem:[#allocation4 + $0x38] sm:$0xff] }
  0x2b   :  { %399 = vmatpush3.msra.mxu0 %v72_v3  ;;  %434 = vmatpush3.msra.mxu1 %v159_v8  ;;  %v63_v21 = vld [vmem:[#allocation2 + $0x20] sm:$0xff]  ;;  %v152_v22 = vld [vmem:[#allocation4 + $0x30] sm:$0xff]  ;;  %v62_v23 = vld [vmem:[#allocation2 + $0x18] sm:$0xff] }
  0x2c   :  { %400 = vmatprep.subr.mxu0 %v579_v0  ;;  %435 = vmatprep.subr.mxu1 %v579_v0  ;;  %v151_v24 = vld [vmem:[#allocation4 + $0x28] sm:$0xff]  ;;  %v61_v25 = vld [vmem:[#allocation2 + $0x10] sm:$0xff]  ;;  %v150_v26 = vld [vmem:[#allocation4 + $0x20] sm:$0xff] }
  0x2d   :  { %401 = vmatpush3.msra.mxu0 %v71_v4  ;;  %436 = vmatpush3.msra.mxu1 %v158_v10  ;;  %v60_v27 = vld [vmem:[#allocation2 + $0x8] sm:$0xff]  ;;  %v149_v28 = vld [vmem:[#allocation4 + $0x18] sm:$0xff]  ;;  %v59_v29 = vld [vmem:[#allocation2] sm:$0xff] }
  0x2e   :  { %402 = vmatprep.subr.mxu0 %v579_v0  ;;  %437 = vmatprep.subr.mxu1 %v579_v0  ;;  %v58_v30 = vld [vmem:[%s678_s0] sm:$0xff]  ;;  %v148_v31 = vld [vmem:[#allocation4 + $0x10] sm:$0xff]  ;;  %v147_v32 = vld [vmem:[#allocation4 + $0x8] sm:$0xff] }
  0x2f   :  { %403 = vmatpush3.msra.mxu0 %v70_v6  ;;  %438 = vmatpush3.msra.mxu1 %v157_v12  ;;  %v146_v33 = vld [vmem:[#allocation4] sm:$0xff]  ;;  %v248_v34 = vld [vmem:[#allocation6 + $0x78] sm:$0xff]  ;;  %v247_v35 = vld [vmem:[#allocation6 + $0x70] sm:$0xff] }
  0x30   :  { %404 = vmatprep.subr.mxu0 %v579_v0  ;;  %439 = vmatprep.subr.mxu1 %v579_v0  ;;  %v246_v36 = vld [vmem:[#allocation6 + $0x68] sm:$0xff]  ;;  %v245_v37 = vld [vmem:[#allocation6 + $0x60] sm:$0xff]  ;;  %v244_v38 = vld [vmem:[#allocation6 + $0x58] sm:$0xff] }
  0x31   :  { %405 = vmatpush3.msra.mxu0 %v69_v9  ;;  %440 = vmatpush3.msra.mxu1 %v156_v14  ;;  %v243_v39 = vld [vmem:[#allocation6 + $0x50] sm:$0xff]  ;;  %v242_v40 = vld [vmem:[#allocation6 + $0x48] sm:$0xff]  ;;  %v241_v41 = vld [vmem:[#allocation6 + $0x40] sm:$0xff] }
  0x32   :  { %406 = vmatprep.subr.mxu0 %v579_v0  ;;  %441 = vmatprep.subr.mxu1 %v579_v0  ;;  %v240_v42 = vld [vmem:[#allocation6 + $0x38] sm:$0xff]  ;;  %v239_v43 = vld [vmem:[#allocation6 + $0x30] sm:$0xff]  ;;  %v238_v44 = vld [vmem:[#allocation6 + $0x28] sm:$0xff] }
  0x33   :  { %407 = vmatpush3.msra.mxu0 %v68_v11  ;;  %442 = vmatpush3.msra.mxu1 %v155_v16  ;;  %v237_v45 = vld [vmem:[#allocation6 + $0x20] sm:$0xff]  ;;  %v236_v46 = vld [vmem:[#allocation6 + $0x18] sm:$0xff]  ;;  %v235_v47 = vld [vmem:[#allocation6 + $0x10] sm:$0xff] }
  0x34   :  { %408 = vmatprep.subr.mxu0 %v579_v0  ;;  %443 = vmatprep.subr.mxu1 %v579_v0  ;;  %v234_v51 = vld [vmem:[#allocation6 + $0x8] sm:$0xff]  ;;  %v233_v52 = vld [vmem:[#allocation6] sm:$0xff] }
  0x35   :  { %409 = vmatpush3.msra.mxu0 %v67_v13  ;;  %444 = vmatpush3.msra.mxu1 %v154_v18 }
  0x36   :  { %410 = vmatprep.subr.mxu0 %v579_v0  ;;  %445 = vmatprep.subr.mxu1 %v579_v0 }
  0x37   :  { %411 = vmatpush3.msra.mxu0 %v66_v15  ;;  %446 = vmatpush3.msra.mxu1 %v153_v20 }
  0x38   :  { %412 = vmatprep.subr.mxu0 %v579_v0  ;;  %447 = vmatprep.subr.mxu1 %v579_v0 }
  0x39   :  { %413 = vmatpush3.msra.mxu0 %v65_v17  ;;  %448 = vmatpush3.msra.mxu1 %v152_v22 }
  0x3a   :  { %414 = vmatprep.subr.mxu0 %v579_v0  ;;  %449 = vmatprep.subr.mxu1 %v579_v0 }
  0x3b   :  { %415 = vmatpush3.msra.mxu0 %v64_v19  ;;  %450 = vmatpush3.msra.mxu1 %v151_v24 }
  0x3c   :  { %416 = vmatprep.subr.mxu0 %v579_v0  ;;  %451 = vmatprep.subr.mxu1 %v579_v0 }
  0x3d   :  { %417 = vmatpush3.msra.mxu0 %v63_v21  ;;  %452 = vmatpush3.msra.mxu1 %v150_v26 }
  0x3e   :  { %418 = vmatprep.subr.mxu0 %v579_v0  ;;  %453 = vmatprep.subr.mxu1 %v579_v0 }
  0x3f   :  { %419 = vmatpush3.msra.mxu0 %v62_v23  ;;  %454 = vmatpush3.msra.mxu1 %v149_v28 }
  0x40   :  { %420 = vmatprep.subr.mxu0 %v579_v0  ;;  %455 = vmatprep.subr.mxu1 %v579_v0 }
  0x41   :  { %421 = vmatpush3.msra.mxu0 %v61_v25  ;;  %456 = vmatpush3.msra.mxu1 %v148_v31 }
  0x42   :  { %422 = vmatprep.subr.mxu0 %v579_v0  ;;  %457 = vmatprep.subr.mxu1 %v579_v0 }
  0x43   :  { %423 = vmatpush3.msra.mxu0 %v60_v27  ;;  %458 = vmatpush3.msra.mxu1 %v147_v32 }
  0x44   :  { %424 = vmatprep.subr.mxu0 %v579_v0  ;;  %459 = vmatprep.subr.mxu1 %v579_v0 }
  0x45   :  { %425 = vmatpush3.msra.mxu0 %v59_v29  ;;  %460 = vmatpush3.msra.mxu1 %v146_v33 }
  0x46   :  { %427 = vmatmul.mubr.f32.vlgmr.msra.gmra.mxu0 %v58_v30  ;;  %464 = vmatprep.subr.mxu0 %v579_v0 }
  0x47   :  { %496 = vmatprep.mubr.msk.f32.mxu0 %vm580_vm0, %v579_v0  ;;  %465 = vmatpush3.msra.mxu0 %v248_v34 }
  0x48   :  { %466 = vmatprep.subr.mxu0 %v579_v0 }
  0x49   :  { %467 = vmatpush3.msra.mxu0 %v247_v35 }
  0x4a   :  { %468 = vmatprep.subr.mxu0 %v579_v0 }
  0x4b   :  { %469 = vmatpush3.msra.mxu0 %v246_v36 }
  0x4c   :  { %470 = vmatprep.subr.mxu0 %v579_v0 }
  0x4d   :  { %471 = vmatpush3.msra.mxu0 %v245_v37 }
  0x4e   :  { %472 = vmatprep.subr.mxu0 %v579_v0 }
  0x4f   :  { %473 = vmatpush3.msra.mxu0 %v244_v38 }
  0x50   :  { %474 = vmatprep.subr.mxu0 %v579_v0 }
  0x51   :  { %475 = vmatpush3.msra.mxu0 %v243_v39 }
  0x52   :  { %476 = vmatprep.subr.mxu0 %v579_v0 }
  0x53   :  { %477 = vmatpush3.msra.mxu0 %v242_v40 }
  0x54   :  { %478 = vmatprep.subr.mxu0 %v579_v0 }
  0x55   :  { %479 = vmatpush3.msra.mxu0 %v241_v41 }
  0x56   :  { %480 = vmatprep.subr.mxu0 %v579_v0 }
  0x57   :  { %481 = vmatpush3.msra.mxu0 %v240_v42 }
  0x58   :  { %482 = vmatprep.subr.mxu0 %v579_v0 }
  0x59   :  { %483 = vmatpush3.msra.mxu0 %v239_v43 }
  0x5a   :  { %484 = vmatprep.subr.mxu0 %v579_v0 }
  0x5b   :  { %485 = vmatpush3.msra.mxu0 %v238_v44 }
  0x5c   :  { %486 = vmatprep.subr.mxu0 %v579_v0 }
  0x5d   :  { %487 = vmatpush3.msra.mxu0 %v237_v45 }
  0x5e   :  { %488 = vmatprep.subr.mxu0 %v579_v0 }
  0x5f   :  { %489 = vmatpush3.msra.mxu0 %v236_v46 }
  0x60   :  { %490 = vmatprep.subr.mxu0 %v579_v0 }
  0x61   :  { %491 = vmatpush3.msra.mxu0 %v235_v47 }
  0x62   :  { %492 = vmatprep.subr.mxu0 %v579_v0 }
  0x63   :  { %493 = vmatpush3.msra.mxu0 %v234_v51 }
  0x64   :  { %494 = vmatprep.subr.mxu0 %v579_v0 }
  0x65   :  { %495 = vmatpush3.msra.mxu0 %v233_v52 }
 0x106   :  { %v141_v48 = vpop.f32.mrf.mxu0 }
 0x107   :  { %v145_v49 = vmax.f32 %v141_v48, 0.0 }
 0x108   :  { %v428_v50 = vpop.f32.mrf.mxu0 }
 0x109   :  { %462 = vmatmul.mubr.f32.vlgmr.msra.gmra.mxu1 %v145_v49 }
 0x1c9   :  { %v228_v53 = vpop.f32.mrf.mxu1 }
 0x1ca   :  { %v232_v54 = vmax.f32 %v228_v53, 0.0 }
 0x1cb   :  { %v463_v55 = vpop.f32.mrf.mxu1 }
 0x1cc   :  { %497 = vmatmul.mubr.f32.vlgmr.msra.gmra.mxu0 %v232_v54 }
 0x28c   :  { %v315_v58 = vpop.f32.mrf.mxu0 }
 0x28d   :  { %v322_v59 = vsel %vm321_vm1, %v315_v58, -1e+30  ;;  %v334_v5 = vsel %vm333_vm2, %v315_v58, 0.0 }
 0x28e   :  { %323 = vmax.xlane.f32.xlu0 %v322_v59  ;;  %v498_v60 = vpop.f32.mrf.mxu0 }
 0x317   :  { %v324_v61 = vpop.xlane.xlu0 %323 }
 0x318   :  { %v325_v62 = vsub.f32 %v315_v58, %v324_v61 }
 0x31a   :  { %v326_v63 = vmul.f32 1.442695, %v325_v62 }
 0x31c   :  { %506 = vpow2.f32 %v326_v63 }
 0x329   :  { %v507_v1 = vpop.eup %506 }
 0x32a   :  { %v328_v0 = vsel %vm321_vm1, %v507_v1, 0.0 }
 0x32b   :  { %329 = vadd.xlane.f32.xlu0 %v328_v0 }
 0x3b4   :  { %v330_v2 = vpop.xlane.xlu0 %329 }
 0x3b5   :  { %508 = vrcp.f32 %v330_v2 }
 0x3c2   :  { %v509_v3 = vpop.eup %508 }
 0x3c3   :  { %v332_v4 = vmul.f32 %v509_v3, %v328_v0 }
 0x3c5   :  { %v335_v6 = vsel %vm321_vm1, %v332_v4, %v334_v5 }
 0x3c6   :  { %336 = vst [vmem:[%s682_s4] sm:$0xff] %v335_v6 }
 0x3c7   :  { %341 = vsyncpa [#allocation3], 1 }
 0x3c8   :  { %342 = vsyncpa [#allocation5], 1 }

</bundles_post_ra>
